<compile_context>
chip_gen: v5e
topology: v5e:2x2
jax: 0.10.0
libtpu: 0.0.40
codegen_flags: <defaults>
</compile_context>

<pallas_src>
import functools

import jax
import jax.numpy as jnp
from jax.experimental import pallas as pl
from jax.experimental.pallas import tpu as pltpu


def _round_up(n, m):
    return ((n + m - 1) // m) * m


def vae_fwd_kernel(x_ref, eps_ref,
                   w1_ref, b1_ref, wcat_ref, bcat_ref,
                   wd1_ref, bd1_ref, wout_ref, bout_ref,
                   recon_ref, lat_ref):
    L_pad = eps_ref.shape[-1]
    cdt = w1_ref.dtype  # MXU compute dtype (f32 or bf16); accumulation is always f32.

    x = x_ref[...].astype(cdt)                                         # [TB, D_pad]

    # ---- encoder ----
    h = jnp.dot(x, w1_ref[...],
                preferred_element_type=jnp.float32) + b1_ref[...]      # [TB, H_pad] f32
    h = jnp.maximum(h, 0.0)                                            # ReLU (VPU)

    # Fused mu/logvar head: one matmul, split on a 128-aligned lane boundary.
    enc = jnp.dot(h.astype(cdt), wcat_ref[...],
                  preferred_element_type=jnp.float32) + bcat_ref[...]  # [TB, 2*L_pad]
    mu = enc[:, :L_pad]
    logvar = enc[:, L_pad:]

    # ---- reparameterize: z = mu + eps * exp(0.5 * logvar)  (f32 VPU/EUP) ----
    std = jnp.exp(0.5 * logvar)
    z = mu + eps_ref[...].astype(jnp.float32) * std

    # ---- decoder ----
    hd = jnp.dot(z.astype(cdt), wd1_ref[...],
                 preferred_element_type=jnp.float32) + bd1_ref[...]    # [TB, H_pad]
    hd = jnp.maximum(hd, 0.0)                                          # ReLU
    recon = jnp.dot(hd.astype(cdt), wout_ref[...],
                    preferred_element_type=jnp.float32) + bout_ref[...]  # [TB, D_pad]

    # ---- lane-dense output stores (all offsets are multiples of 128) ----
    recon_ref[...] = recon
    lat_ref[:, :L_pad] = mu
    lat_ref[:, L_pad:2 * L_pad] = logvar
    lat_ref[:, 2 * L_pad:] = z


def _pad2(a, rows, cols, dtype):
    out = jnp.zeros((rows, cols), dtype)
    return out.at[:a.shape[0], :a.shape[1]].set(a.astype(dtype))


@functools.partial(jax.jit, static_argnames=("compute_dtype", "tile_b"))
def vae_forward(x, eps, params, *, compute_dtype=jnp.float32, tile_b=128):
    """x: [B, T, F] f32, eps: [B, L] f32 (the randn_like draw, passed explicitly).

    Returns (reconstruction [B, T, F], mu [B, L], logvar [B, L], z [B, L]).
    """
    B, T, F = x.shape
    D_in = T * F
    H = params["w1"].shape[1]
    L = params["wmu"].shape[1]

    # Lane-dense padding (multiples of 128 on the lane axis, 8 on the sublane axis).
    D_pad = _round_up(D_in, 128)
    H_pad = _round_up(H, 128)
    L_pad = _round_up(L, 128)
    TB = min(tile_b, _round_up(B, 8))       # batch tile (>= 8 sublanes)
    B_pad = _round_up(B, TB)

    # ---- pad inputs (zeros in padded rows/cols; sliced off afterwards).
    # On the bf16 path the activations are also DMA'd as bf16 (half the bytes);
    # eps stays f32 so the reparameterization noise is exact.
    x_flat = x.reshape(B, D_in)
    x_p = jnp.zeros((B_pad, D_pad), compute_dtype).at[:B, :D_in].set(
        x_flat.astype(compute_dtype))
    eps_p = jnp.zeros((B_pad, L_pad), jnp.float32).at[:B, :L].set(eps)

    # ---- pad weights; padded columns/rows are zero so results are exact ----
    w1 = _pad2(params["w1"], D_pad, H_pad, compute_dtype)
    b1 = _pad2(params["b1"], 1, H_pad, jnp.float32)
    wcat = jnp.concatenate([_pad2(params["wmu"], H_pad, L_pad, compute_dtype),
                            _pad2(params["wlv"], H_pad, L_pad, compute_dtype)], axis=1)
    bcat = jnp.concatenate([_pad2(params["bmu"], 1, L_pad, jnp.float32),
                            _pad2(params["blv"], 1, L_pad, jnp.float32)], axis=1)
    wd1 = _pad2(params["wd1"], L_pad, H_pad, compute_dtype)
    bd1 = _pad2(params["bd1"], 1, H_pad, jnp.float32)
    wout = _pad2(params["wout"], H_pad, D_pad, compute_dtype)
    bout = _pad2(params["bout"], 1, D_pad, jnp.float32)

    weights = (w1, b1, wcat, bcat, wd1, bd1, wout, bout)

    # ---- VMEM budget: resident weights (x2 buffers) + pipelined tiles + headroom ----
    wbytes = sum(int(a.size) * a.dtype.itemsize for a in weights)
    act_bytes = 4 * TB * (D_pad + L_pad            # input tiles
                          + 2 * H_pad + 2 * L_pad  # intermediates (h, enc/hd)
                          + D_pad + 3 * L_pad)     # output tiles
    vmem_limit = int(min(64 << 20, max(32 << 20, 2 * wbytes + 3 * act_bytes + (8 << 20))))

    grid = (B_pad // TB,)

    def tile_spec(cols):
        return pl.BlockSpec((TB, cols), lambda i: (i, 0))

    def resident_spec(a):
        return pl.BlockSpec(a.shape, lambda i: (0, 0))

    in_specs = [
        tile_spec(D_pad),        # x
        tile_spec(L_pad),        # eps
        resident_spec(w1), resident_spec(b1),
        resident_spec(wcat), resident_spec(bcat),
        resident_spec(wd1), resident_spec(bd1),
        resident_spec(wout), resident_spec(bout),
    ]
    out_specs = [
        tile_spec(D_pad),        # recon slab
        tile_spec(3 * L_pad),    # packed [mu | logvar | z] slab
    ]
    out_shape = [
        jax.ShapeDtypeStruct((B_pad, D_pad), jnp.float32),
        jax.ShapeDtypeStruct((B_pad, 3 * L_pad), jnp.float32),
    ]

    recon_p, lat_p = pl.pallas_call(
        vae_fwd_kernel,
        out_shape=out_shape,
        grid=grid,
        in_specs=in_specs,
        out_specs=out_specs,
        compiler_params=pltpu.CompilerParams(
            dimension_semantics=("parallel",),
            vmem_limit_bytes=vmem_limit,
        ),
    )(x_p, eps_p, *weights)

    reconstruction = recon_p[:B, :D_in].reshape(B, T, F)
    mu = lat_p[:B, 0:L]
    logvar = lat_p[:B, L_pad:L_pad + L]
    z = lat_p[:B, 2 * L_pad:2 * L_pad + L]
    return reconstruction, mu, logvar, z


def init_params(key, d_in, hidden, latent):
    ks = jax.random.split(key, 6)
    scale = 0.05
    return {
        "w1":   scale * jax.random.normal(ks[0], (d_in, hidden), jnp.float32),
        "b1":   jnp.zeros((1, hidden), jnp.float32),
        "wmu":  scale * jax.random.normal(ks[1], (hidden, latent), jnp.float32),
        "bmu":  jnp.zeros((1, latent), jnp.float32),
        "wlv":  scale * jax.random.normal(ks[2], (hidden, latent), jnp.float32),
        "blv":  jnp.zeros((1, latent), jnp.float32),
        "wd1":  scale * jax.random.normal(ks[3], (latent, hidden), jnp.float32),
        "bd1":  jnp.zeros((1, hidden), jnp.float32),
        "wout": scale * jax.random.normal(ks[4], (hidden, d_in), jnp.float32),
        "bout": jnp.zeros((1, d_in), jnp.float32),
    }


def _reference(x, eps, params):
    B, T, F = x.shape
    xf = x.reshape(B, T * F)
    h = jnp.maximum(xf @ params["w1"] + params["b1"], 0.0)
    mu = h @ params["wmu"] + params["bmu"]
    lv = h @ params["wlv"] + params["blv"]
    z = mu + eps * jnp.exp(0.5 * lv)
    hd = jnp.maximum(z @ params["wd1"] + params["bd1"], 0.0)
    rec = (hd @ params["wout"] + params["bout"]).reshape(B, T, F)
    return rec, mu, lv, z


if __name__ == "__main__":
    # Small shapes consistent with the module's [batch, seq, feature] contract
    # (full-size would be [x, 70, 6]; use [4, 8, 6] here).
    B, T, F = 4, 8, 6
    H, L = 32, 8
    D_in = T * F

    key = jax.random.PRNGKey(0)
    kx, keps, kp = jax.random.split(key, 3)

    x = jax.random.normal(kx, (B, T, F), jnp.float32)
    eps = jax.random.normal(keps, (B, L), jnp.float32)  # fixed randn_like draw
    params = init_params(kp, D_in, H, L)

    # ---- f32 path: exact match against the plain-JAX reference ----
    recon, mu, logvar, z = vae_forward(x, eps, params, compute_dtype=jnp.float32)
    jax.block_until_ready((recon, mu, logvar, z))

    assert recon.shape == (B, T, F)
    assert mu.shape == (B, L) and logvar.shape == (B, L) and z.shape == (B, L)

    rec_ref, mu_ref, lv_ref, z_ref = _reference(x, eps, params)
    assert jnp.allclose(recon, rec_ref, atol=1e-5)
    assert jnp.allclose(mu, mu_ref, atol=1e-5)
    assert jnp.allclose(logvar, lv_ref, atol=1e-5)
    assert jnp.allclose(z, z_ref, atol=1e-5)

    # ---- bf16 MXU path (v6e/v7x-oriented): loose tolerance sanity check ----
    recon_b, mu_b, logvar_b, z_b = vae_forward(x, eps, params,
                                               compute_dtype=jnp.bfloat16)
    jax.block_until_ready((recon_b, mu_b, logvar_b, z_b))
    assert jnp.allclose(recon_b, rec_ref, atol=5e-2, rtol=5e-2)
    assert jnp.allclose(mu_b, mu_ref, atol=5e-2, rtol=5e-2)
    assert jnp.allclose(logvar_b, lv_ref, atol=5e-2, rtol=5e-2)
    assert jnp.allclose(z_b, z_ref, atol=5e-2, rtol=5e-2)

    print("KERNEL_OK")
</pallas_src>

<mosaic_0001>
module attributes {stable_mosaic.version = 11 : i64} {
  func.func @vae_fwd_kernel(%arg0: i32, %arg1: memref<8x128xf32, #tpu.memory_space<vmem>>, %arg2: memref<8x128xf32, #tpu.memory_space<vmem>>, %arg3: memref<128x128xf32, #tpu.memory_space<vmem>>, %arg4: memref<1x128xf32, #tpu.memory_space<vmem>>, %arg5: memref<128x256xf32, #tpu.memory_space<vmem>>, %arg6: memref<1x256xf32, #tpu.memory_space<vmem>>, %arg7: memref<128x128xf32, #tpu.memory_space<vmem>>, %arg8: memref<1x128xf32, #tpu.memory_space<vmem>>, %arg9: memref<128x128xf32, #tpu.memory_space<vmem>>, %arg10: memref<1x128xf32, #tpu.memory_space<vmem>>, %arg11: memref<8x128xf32, #tpu.memory_space<vmem>>, %arg12: memref<8x384xf32, #tpu.memory_space<vmem>>) attributes {dimension_semantics = [#tpu.dimension_semantics<parallel>], iteration_bounds = array<i64: 1>, scalar_prefetch = 0 : i64, scratch_operands = 0 : i64, tpu.core_type = #tpu.core_type<tc>, window_params = [{transform_indices = @transform_0, window_bounds = array<i64: 8, 128>}, {transform_indices = @transform_1, window_bounds = array<i64: 8, 128>}, {pipeline_mode = #tpu.pipeline_mode<synchronous>, transform_indices = @transform_2, window_bounds = array<i64: 128, 128>}, {pipeline_mode = #tpu.pipeline_mode<synchronous>, transform_indices = @transform_3, window_bounds = array<i64: 1, 128>}, {pipeline_mode = #tpu.pipeline_mode<synchronous>, transform_indices = @transform_4, window_bounds = array<i64: 128, 256>}, {pipeline_mode = #tpu.pipeline_mode<synchronous>, transform_indices = @transform_5, window_bounds = array<i64: 1, 256>}, {pipeline_mode = #tpu.pipeline_mode<synchronous>, transform_indices = @transform_6, window_bounds = array<i64: 128, 128>}, {pipeline_mode = #tpu.pipeline_mode<synchronous>, transform_indices = @transform_7, window_bounds = array<i64: 1, 128>}, {pipeline_mode = #tpu.pipeline_mode<synchronous>, transform_indices = @transform_8, window_bounds = array<i64: 128, 128>}, {pipeline_mode = #tpu.pipeline_mode<synchronous>, transform_indices = @transform_9, window_bounds = array<i64: 1, 128>}, {transform_indices = @transform_10, window_bounds = array<i64: 8, 128>}, {transform_indices = @transform_11, window_bounds = array<i64: 8, 384>}]} {
    %c0 = arith.constant 0 : index
    %c0_0 = arith.constant 0 : index
    %0 = vector.load %arg1[%c0, %c0_0] : memref<8x128xf32, #tpu.memory_space<vmem>>, vector<8x128xf32>
    %c0_1 = arith.constant 0 : index
    %c0_2 = arith.constant 0 : index
    %1 = vector.load %arg3[%c0_1, %c0_2] : memref<128x128xf32, #tpu.memory_space<vmem>>, vector<128x128xf32>
    %cst = arith.constant dense<0.000000e+00> : vector<8x128xf32>
    %2 = tpu.matmul %0, %1, %cst {dimension_numbers = #tpu.dot_dimension_numbers<[1], [0], [0], [1], [0, 0, 1, 1], [], []>} : vector<8x128xf32>, vector<128x128xf32>, vector<8x128xf32> -> vector<8x128xf32>
    %c0_3 = arith.constant 0 : index
    %c0_4 = arith.constant 0 : index
    %3 = vector.load %arg4[%c0_3, %c0_4] : memref<1x128xf32, #tpu.memory_space<vmem>>, vector<1x128xf32>
    %4 = vector.broadcast %3 : vector<1x128xf32> to vector<8x128xf32>
    %5 = arith.addf %2, %4 : vector<8x128xf32>
    %cst_5 = arith.constant 0.000000e+00 : f32
    %6 = vector.broadcast %cst_5 : f32 to vector<8x128xf32>
    %7 = arith.maximumf %5, %6 : vector<8x128xf32>
    %c0_6 = arith.constant 0 : index
    %c0_7 = arith.constant 0 : index
    %8 = vector.load %arg5[%c0_6, %c0_7] : memref<128x256xf32, #tpu.memory_space<vmem>>, vector<128x256xf32>
    %cst_8 = arith.constant dense<0.000000e+00> : vector<8x256xf32>
    %9 = tpu.matmul %7, %8, %cst_8 {dimension_numbers = #tpu.dot_dimension_numbers<[1], [0], [0], [1], [0, 0, 1, 1], [], []>} : vector<8x128xf32>, vector<128x256xf32>, vector<8x256xf32> -> vector<8x256xf32>
    %c0_9 = arith.constant 0 : index
    %c0_10 = arith.constant 0 : index
    %10 = vector.load %arg6[%c0_9, %c0_10] : memref<1x256xf32, #tpu.memory_space<vmem>>, vector<1x256xf32>
    %11 = vector.broadcast %10 : vector<1x256xf32> to vector<8x256xf32>
    %12 = arith.addf %9, %11 : vector<8x256xf32>
    %13 = vector.extract_strided_slice %12 {offsets = [0, 0], sizes = [8, 128], strides = [1, 1]} : vector<8x256xf32> to vector<8x128xf32>
    %14 = vector.extract_strided_slice %12 {offsets = [0, 128], sizes = [8, 128], strides = [1, 1]} : vector<8x256xf32> to vector<8x128xf32>
    %cst_11 = arith.constant 5.000000e-01 : f32
    %15 = vector.broadcast %cst_11 : f32 to vector<8x128xf32>
    %16 = arith.mulf %15, %14 : vector<8x128xf32>
    %17 = math.exp %16 : vector<8x128xf32>
    %c0_12 = arith.constant 0 : index
    %c0_13 = arith.constant 0 : index
    %18 = vector.load %arg2[%c0_12, %c0_13] : memref<8x128xf32, #tpu.memory_space<vmem>>, vector<8x128xf32>
    %19 = arith.mulf %18, %17 : vector<8x128xf32>
    %20 = arith.addf %13, %19 : vector<8x128xf32>
    %c0_14 = arith.constant 0 : index
    %c0_15 = arith.constant 0 : index
    %21 = vector.load %arg7[%c0_14, %c0_15] : memref<128x128xf32, #tpu.memory_space<vmem>>, vector<128x128xf32>
    %cst_16 = arith.constant dense<0.000000e+00> : vector<8x128xf32>
    %22 = tpu.matmul %20, %21, %cst_16 {dimension_numbers = #tpu.dot_dimension_numbers<[1], [0], [0], [1], [0, 0, 1, 1], [], []>} : vector<8x128xf32>, vector<128x128xf32>, vector<8x128xf32> -> vector<8x128xf32>
    %c0_17 = arith.constant 0 : index
    %c0_18 = arith.constant 0 : index
    %23 = vector.load %arg8[%c0_17, %c0_18] : memref<1x128xf32, #tpu.memory_space<vmem>>, vector<1x128xf32>
    %24 = vector.broadcast %23 : vector<1x128xf32> to vector<8x128xf32>
    %25 = arith.addf %22, %24 : vector<8x128xf32>
    %cst_19 = arith.constant 0.000000e+00 : f32
    %26 = vector.broadcast %cst_19 : f32 to vector<8x128xf32>
    %27 = arith.maximumf %25, %26 : vector<8x128xf32>
    %c0_20 = arith.constant 0 : index
    %c0_21 = arith.constant 0 : index
    %28 = vector.load %arg9[%c0_20, %c0_21] : memref<128x128xf32, #tpu.memory_space<vmem>>, vector<128x128xf32>
    %cst_22 = arith.constant dense<0.000000e+00> : vector<8x128xf32>
    %29 = tpu.matmul %27, %28, %cst_22 {dimension_numbers = #tpu.dot_dimension_numbers<[1], [0], [0], [1], [0, 0, 1, 1], [], []>} : vector<8x128xf32>, vector<128x128xf32>, vector<8x128xf32> -> vector<8x128xf32>
    %c0_23 = arith.constant 0 : index
    %c0_24 = arith.constant 0 : index
    %30 = vector.load %arg10[%c0_23, %c0_24] : memref<1x128xf32, #tpu.memory_space<vmem>>, vector<1x128xf32>
    %31 = vector.broadcast %30 : vector<1x128xf32> to vector<8x128xf32>
    %32 = arith.addf %29, %31 : vector<8x128xf32>
    %c0_25 = arith.constant 0 : index
    %c0_26 = arith.constant 0 : index
    %33 = vector.load %arg11[%c0_25, %c0_26] : memref<8x128xf32, #tpu.memory_space<vmem>>, vector<8x128xf32>
    tpu.vector_store %arg11[%c0_25, %c0_26], %32 {strides = array<i32>} : memref<8x128xf32, #tpu.memory_space<vmem>>, vector<8x128xf32>,
    %c0_27 = arith.constant 0 : index
    %c0_28 = arith.constant 0 : index
    %34 = vector.load %arg12[%c0_27, %c0_28] : memref<8x384xf32, #tpu.memory_space<vmem>>, vector<8x128xf32>
    tpu.vector_store %arg12[%c0_27, %c0_28], %13 {strides = array<i32>} : memref<8x384xf32, #tpu.memory_space<vmem>>, vector<8x128xf32>,
    %c0_29 = arith.constant 0 : index
    %c128 = arith.constant 128 : index
    %35 = vector.load %arg12[%c0_29, %c128] : memref<8x384xf32, #tpu.memory_space<vmem>>, vector<8x128xf32>
    tpu.vector_store %arg12[%c0_29, %c128], %14 {strides = array<i32>} : memref<8x384xf32, #tpu.memory_space<vmem>>, vector<8x128xf32>,
    %c0_30 = arith.constant 0 : index
    %c256 = arith.constant 256 : index
    %36 = vector.load %arg12[%c0_30, %c256] : memref<8x384xf32, #tpu.memory_space<vmem>>, vector<8x128xf32>
    tpu.vector_store %arg12[%c0_30, %c256], %20 {strides = array<i32>} : memref<8x384xf32, #tpu.memory_space<vmem>>, vector<8x128xf32>,
    return
  }
  func.func @transform_0(%arg0: i32) -> (i32, i32) {
    %c0_i32 = arith.constant 0 : i32
    %c0_i32_0 = arith.constant 0 : i32
    return %arg0, %c0_i32 : i32, i32
  }
  func.func @transform_1(%arg0: i32) -> (i32, i32) {
    %c0_i32 = arith.constant 0 : i32
    %c0_i32_0 = arith.constant 0 : i32
    return %arg0, %c0_i32 : i32, i32
  }
  func.func @transform_2(%arg0: i32) -> (i32, i32) {
    %c0_i32 = arith.constant 0 : i32
    %c0_i32_0 = arith.constant 0 : i32
    %c0_i32_1 = arith.constant 0 : i32
    return %c0_i32, %c0_i32_0 : i32, i32
  }
  func.func @transform_3(%arg0: i32) -> (i32, i32) {
    %c0_i32 = arith.constant 0 : i32
    %c0_i32_0 = arith.constant 0 : i32
    %c0_i32_1 = arith.constant 0 : i32
    return %c0_i32, %c0_i32_0 : i32, i32
  }
  func.func @transform_4(%arg0: i32) -> (i32, i32) {
    %c0_i32 = arith.constant 0 : i32
    %c0_i32_0 = arith.constant 0 : i32
    %c0_i32_1 = arith.constant 0 : i32
    return %c0_i32, %c0_i32_0 : i32, i32
  }
  func.func @transform_5(%arg0: i32) -> (i32, i32) {
    %c0_i32 = arith.constant 0 : i32
    %c0_i32_0 = arith.constant 0 : i32
    %c0_i32_1 = arith.constant 0 : i32
    return %c0_i32, %c0_i32_0 : i32, i32
  }
  func.func @transform_6(%arg0: i32) -> (i32, i32) {
    %c0_i32 = arith.constant 0 : i32
    %c0_i32_0 = arith.constant 0 : i32
    %c0_i32_1 = arith.constant 0 : i32
    return %c0_i32, %c0_i32_0 : i32, i32
  }
  func.func @transform_7(%arg0: i32) -> (i32, i32) {
    %c0_i32 = arith.constant 0 : i32
    %c0_i32_0 = arith.constant 0 : i32
    %c0_i32_1 = arith.constant 0 : i32
    return %c0_i32, %c0_i32_0 : i32, i32
  }
  func.func @transform_8(%arg0: i32) -> (i32, i32) {
    %c0_i32 = arith.constant 0 : i32
    %c0_i32_0 = arith.constant 0 : i32
    %c0_i32_1 = arith.constant 0 : i32
    return %c0_i32, %c0_i32_0 : i32, i32
  }
  func.func @transform_9(%arg0: i32) -> (i32, i32) {
    %c0_i32 = arith.constant 0 : i32
    %c0_i32_0 = arith.constant 0 : i32
    %c0_i32_1 = arith.constant 0 : i32
    return %c0_i32, %c0_i32_0 : i32, i32
  }
  func.func @transform_10(%arg0: i32) -> (i32, i32) {
    %c0_i32 = arith.constant 0 : i32
    %c0_i32_0 = arith.constant 0 : i32
    return %arg0, %c0_i32 : i32, i32
  }
  func.func @transform_11(%arg0: i32) -> (i32, i32) {
    %c0_i32 = arith.constant 0 : i32
    %c0_i32_0 = arith.constant 0 : i32
    return %arg0, %c0_i32 : i32, i32
  }
}

</mosaic_0001>

<bundles_post_ra>
// kernel: vae_forward.1
= control target key start
LH: loop header
LB: loop body
LE: loop exit
PB: predicated region body
PF: predicated region fallthrough
CT: control target
= control target key end

     0   :  { %s591_s2 = inlined_call_operand.vmem [shape: f32[128,128], index: 2, kind: input, shape index: {}]   ;;  %s592_s4 = inlined_call_operand.vmem [shape: f32[128,256], index: 4, kind: input, shape index: {}]   ;;  %s593_s3 = inlined_call_operand.vmem [shape: f32[1,128], index: 3, kind: input, shape index: {}]   ;;  %s594_s0 = inlined_call_operand.vmem [shape: f32[8,128], index: 0, kind: input, shape index: {}]   ;;  %s595_s6 = inlined_call_operand.vmem [shape: f32[128,128], index: 6, kind: input, shape index: {}]   ;;  %s596_s7 = inlined_call_operand.vmem [shape: f32[1,128], index: 7, kind: input, shape index: {}]   ;;  %s597_s8 = inlined_call_operand.vmem [shape: f32[128,128], index: 8, kind: input, shape index: {}]   ;;  %s598_s5 = inlined_call_operand.vmem [shape: f32[1,256], index: 5, kind: input, shape index: {}]   ;;  %s599_s11 = inlined_call_operand.vmem [shape: f32[8,384], index: 11, kind: output, shape index: {1}]   ;;  %s600_s1 = inlined_call_operand.vmem [shape: f32[8,128], index: 1, kind: input, shape index: {}]   ;;  %s601_s9 = inlined_call_operand.vmem [shape: f32[1,128], index: 9, kind: input, shape index: {}]   ;;  %s602_s10 = inlined_call_operand.vmem [shape: f32[8,128], index: 10, kind: output, shape index: {0}]  }
   0x1   :  { %v53_v0 = vld [vmem:[%s591_s2 + $0x78] sm:$0xff]  ;;  %v52_v1 = vld [vmem:[%s591_s2 + $0x70] sm:$0xff]  ;;  %v51_v2 = vld [vmem:[%s591_s2 + $0x68] sm:$0xff] }
   0x2   :  { %58 = vmatpush.msra.mxu0 %v53_v0  ;;  %v50_v3 = vld [vmem:[%s591_s2 + $0x60] sm:$0xff]  ;;  %v49_v4 = vld [vmem:[%s591_s2 + $0x58] sm:$0xff]  ;;  %v109_v5 = vld [vmem:[%s592_s4 + $0xf0] sm:$0xff] }
   0x3   :  { %117 = vmatpush.msra.mxu1 %v109_v5  ;;  %v110_v6 = vld [vmem:[%s592_s4 + $0xf8] sm:$0xff]  ;;  %v107_v7 = vld [vmem:[%s592_s4 + $0xe0] sm:$0xff]  ;;  %v108_v8 = vld [vmem:[%s592_s4 + $0xe8] sm:$0xff] }
   0x4   :  { %59 = vmatpush.msra.mxu0 %v52_v1  ;;  %137 = vmatpush.msra.mxu2 %v110_v6  ;;  %v105_v9 = vld [vmem:[%s592_s4 + $0xd0] sm:$0xff]  ;;  %v106_v11 = vld [vmem:[%s592_s4 + $0xd8] sm:$0xff]  ;;  %v103_v12 = vld [vmem:[%s592_s4 + $0xc0] sm:$0xff] }
   0x5   :  { %v48_v10 = vld [vmem:[%s591_s2 + $0x50] sm:$0xff]  ;;  %118 = vmatpush.msra.mxu1 %v107_v7  ;;  %v47_v13 = vld [vmem:[%s591_s2 + $0x48] sm:$0xff]  ;;  %v46_v16 = vld [vmem:[%s591_s2 + $0x40] sm:$0xff] }
   0x6   :  { %60 = vmatpush.msra.mxu0 %v51_v2  ;;  %138 = vmatpush.msra.mxu2 %v108_v8  ;;  %v104_v14 = vld [vmem:[%s592_s4 + $0xc8] sm:$0xff]  ;;  %v101_v15 = vld [vmem:[%s592_s4 + $0xb0] sm:$0xff]  ;;  %v102_v17 = vld [vmem:[%s592_s4 + $0xb8] sm:$0xff] }
   0x7   :  { %119 = vmatpush.msra.mxu1 %v105_v9  ;;  %v99_v18 = vld [vmem:[%s592_s4 + $0xa0] sm:$0xff]  ;;  %v45_v19 = vld [vmem:[%s591_s2 + $0x38] sm:$0xff]  ;;  %v100_v20 = vld [vmem:[%s592_s4 + $0xa8] sm:$0xff] }
   0x8   :  { %61 = vmatpush.msra.mxu0 %v50_v3  ;;  %139 = vmatpush.msra.mxu2 %v106_v11  ;;  %v97_v21 = vld [vmem:[%s592_s4 + $0x90] sm:$0xff]  ;;  %v98_v23 = vld [vmem:[%s592_s4 + $0x98] sm:$0xff]  ;;  %v95_v24 = vld [vmem:[%s592_s4 + $0x80] sm:$0xff] }
   0x9   :  { %120 = vmatpush.msra.mxu1 %v103_v12  ;;  %v44_v22 = vld [vmem:[%s591_s2 + $0x30] sm:$0xff]  ;;  %v43_v25 = vld [vmem:[%s591_s2 + $0x28] sm:$0xff]  ;;  %v42_v28 = vld [vmem:[%s591_s2 + $0x20] sm:$0xff] }
   0xa   :  { %62 = vmatpush.msra.mxu0 %v49_v4  ;;  %140 = vmatpush.msra.mxu2 %v104_v14  ;;  %v96_v26 = vld [vmem:[%s592_s4 + $0x88] sm:$0xff]  ;;  %v93_v27 = vld [vmem:[%s592_s4 + $0x70] sm:$0xff]  ;;  %v94_v29 = vld [vmem:[%s592_s4 + $0x78] sm:$0xff] }
   0xb   :  { %121 = vmatpush.msra.mxu1 %v101_v15  ;;  %v91_v30 = vld [vmem:[%s592_s4 + $0x60] sm:$0xff]  ;;  %v41_v31 = vld [vmem:[%s591_s2 + $0x18] sm:$0xff]  ;;  %v92_v32 = vld [vmem:[%s592_s4 + $0x68] sm:$0xff] }
   0xc   :  { %63 = vmatpush.msra.mxu0 %v48_v10  ;;  %141 = vmatpush.msra.mxu2 %v102_v17  ;;  %v89_v33 = vld [vmem:[%s592_s4 + $0x50] sm:$0xff]  ;;  %v90_v35 = vld [vmem:[%s592_s4 + $0x58] sm:$0xff]  ;;  %v87_v36 = vld [vmem:[%s592_s4 + $0x40] sm:$0xff] }
   0xd   :  { %122 = vmatpush.msra.mxu1 %v99_v18  ;;  %v40_v34 = vld [vmem:[%s591_s2 + $0x10] sm:$0xff]  ;;  %v39_v37 = vld [vmem:[%s591_s2 + $0x8] sm:$0xff]  ;;  %v38_v40 = vld [vmem:[%s591_s2] sm:$0xff] }
   0xe   :  { %64 = vmatpush.msra.mxu0 %v47_v13  ;;  %142 = vmatpush.msra.mxu2 %v100_v20  ;;  %v88_v38 = vld [vmem:[%s592_s4 + $0x48] sm:$0xff]  ;;  %v85_v39 = vld [vmem:[%s592_s4 + $0x30] sm:$0xff]  ;;  %v86_v41 = vld [vmem:[%s592_s4 + $0x38] sm:$0xff] }
   0xf   :  { %123 = vmatpush.msra.mxu1 %v97_v21  ;;  %v37_v42 = vld [vmem:[%s594_s0] sm:$0xff]  ;;  %v84_v44 = vld [vmem:[%s592_s4 + $0x28] sm:$0xff]  ;;  %v81_v45 = vld [vmem:[%s592_s4 + $0x10] sm:$0xff] }
  0x10   :  { %65 = vmatpush.msra.mxu0 %v46_v16  ;;  %143 = vmatpush.msra.mxu2 %v98_v23  ;;  %v83_v43 = vld [vmem:[%s592_s4 + $0x20] sm:$0xff]  ;;  %v82_v46 = vld [vmem:[%s592_s4 + $0x18] sm:$0xff]  ;;  %v80_v48 = vld [vmem:[%s592_s4 + $0x8] sm:$0xff] }
  0x11   :  { %124 = vmatpush.msra.mxu1 %v95_v24  ;;  %v79_v47 = vld [vmem:[%s592_s4] sm:$0xff]  ;;  %v178_v49 = vld [vmem:[%s595_s6 + $0x78] sm:$0xff]  ;;  %v177_v50 = vld [vmem:[%s595_s6 + $0x70] sm:$0xff] }
  0x12   :  { %66 = vmatpush.msra.mxu0 %v45_v19  ;;  %144 = vmatpush.msra.mxu2 %v96_v26  ;;  %v176_v51 = vld [vmem:[%s595_s6 + $0x68] sm:$0xff]  ;;  %v175_v52 = vld [vmem:[%s595_s6 + $0x60] sm:$0xff]  ;;  %v174_v57 = vld [vmem:[%s595_s6 + $0x58] sm:$0xff] }
  0x13   :  { %125 = vmatpush.msra.mxu1 %v93_v27  ;;  %183 = vmatpush.msra.mxu3 %v178_v49  ;;  %v256_v53 = vld [vmem:[%s593_s3] ss:$0 sm:$0xff]  ;;  %v173_v58 = vld [vmem:[%s595_s6 + $0x50] sm:$0xff]  ;;  %v172_v59 = vld [vmem:[%s595_s6 + $0x48] sm:$0xff] }
  0x14   :  { %67 = vmatpush.msra.mxu0 %v44_v22  ;;  %145 = vmatpush.msra.mxu2 %v94_v29  ;;  %v171_v60 = vld [vmem:[%s595_s6 + $0x40] sm:$0xff]  ;;  %v170_v61 = vld [vmem:[%s595_s6 + $0x38] sm:$0xff]  ;;  %v169_v62 = vld [vmem:[%s595_s6 + $0x30] sm:$0xff] }
  0x15   :  { %126 = vmatpush.msra.mxu1 %v91_v30  ;;  %184 = vmatpush.msra.mxu3 %v177_v50  ;;  %v168_v63 = vld [vmem:[%s595_s6 + $0x28] sm:$0xff]  ;;  %v167_v0 = vld [vmem:[%s595_s6 + $0x20] sm:$0xff]  ;;  %v166_v1 = vld [vmem:[%s595_s6 + $0x18] sm:$0xff] }
  0x16   :  { %68 = vmatpush.msra.mxu0 %v43_v25  ;;  %146 = vmatpush.msra.mxu2 %v92_v32  ;;  %v165_v2 = vld [vmem:[%s595_s6 + $0x10] sm:$0xff]  ;;  %v164_v3 = vld [vmem:[%s595_s6 + $0x8] sm:$0xff]  ;;  %v163_v4 = vld [vmem:[%s595_s6] sm:$0xff] }
  0x17   :  { %127 = vmatpush.msra.mxu1 %v89_v33  ;;  %185 = vmatpush.msra.mxu3 %v176_v51  ;;  %v219_v5 = vld [vmem:[%s597_s8 + $0x78] sm:$0xff]  ;;  %v218_v6 = vld [vmem:[%s597_s8 + $0x70] sm:$0xff]  ;;  %v111_v7 = vld [vmem:[%s598_s5] sm:$0x3] }
  0x18   :  { %69 = vmatpush.msra.mxu0 %v42_v28  ;;  %147 = vmatpush.msra.mxu2 %v90_v35  ;;  %v217_v8 = vld [vmem:[%s597_s8 + $0x68] sm:$0xff]  ;;  %v216_v9 = vld [vmem:[%s597_s8 + $0x60] sm:$0xff]  ;;  %v113_v10 = vperm.slane %v111_v7, 0  ;;  %v215_v11 = vld [vmem:[%s597_s8 + $0x58] sm:$0xff]  ;;  %v114_v16 = vperm.slane %v111_v7, 1 }
  0x19   :  { %128 = vmatpush.msra.mxu1 %v87_v36  ;;  %186 = vmatpush.msra.mxu3 %v175_v52  ;;  %v214_v13 = vld [vmem:[%s597_s8 + $0x50] sm:$0xff]  ;;  %v213_v15 = vld [vmem:[%s597_s8 + $0x48] sm:$0xff]  ;;  %v212_v17 = vld [vmem:[%s597_s8 + $0x40] sm:$0xff] }
  0x1a   :  { %70 = vmatpush.msra.mxu0 %v41_v31  ;;  %148 = vmatpush.msra.mxu2 %v88_v38  ;;  %v211_v19 = vld [vmem:[%s597_s8 + $0x38] sm:$0xff]  ;;  %v210_v21 = vld [vmem:[%s597_s8 + $0x30] sm:$0xff]  ;;  %v209_v23 = vld [vmem:[%s597_s8 + $0x28] sm:$0xff] }
  0x1b   :  { %129 = vmatpush.msra.mxu1 %v85_v39  ;;  %187 = vmatpush.msra.mxu3 %v174_v57  ;;  %v208_v25 = vld [vmem:[%s597_s8 + $0x20] sm:$0xff]  ;;  %v207_v26 = vld [vmem:[%s597_s8 + $0x18] sm:$0xff]  ;;  %v206_v31 = vld [vmem:[%s597_s8 + $0x10] sm:$0xff] }
  0x1c   :  { %71 = vmatpush.msra.mxu0 %v40_v34  ;;  %149 = vmatpush.msra.mxu2 %v86_v41  ;;  %v160_v27 = vld [vmem:[%s600_s1] sm:$0xff]  ;;  %v205_v32 = vld [vmem:[%s597_s8 + $0x8] sm:$0xff] }
  0x1d   :  { %130 = vmatpush.msra.mxu1 %v83_v43  ;;  %188 = vmatpush.msra.mxu3 %v173_v58  ;;  %v204_v33 = vld [vmem:[%s597_s8] sm:$0xff] }
  0x1e   :  { %72 = vmatpush.msra.mxu0 %v39_v37  ;;  %150 = vmatpush.msra.mxu2 %v84_v44  ;;  %v257_v34 = vld [vmem:[%s596_s7] ss:$0 sm:$0xff] }
  0x1f   :  { %131 = vmatpush.msra.mxu1 %v81_v45  ;;  %189 = vmatpush.msra.mxu3 %v172_v59  ;;  %v258_v38 = vld [vmem:[%s601_s9] ss:$0 sm:$0xff] }
  0x20   :  { %73 = vmatpush.msra.mxu0 %v38_v40  ;;  %151 = vmatpush.msra.mxu2 %v82_v46 }
  0x21   :  { %74 = vmatmul.f32.vlgmr.msra.gmra.mxu0 %v37_v42  ;;  %132 = vmatpush.msra.mxu1 %v79_v47 }
  0x22   :  { %152 = vmatpush.msra.mxu2 %v80_v48  ;;  %190 = vmatpush.msra.mxu3 %v171_v60 }
  0x23   :  { %224 = vmatpush.msrb.mxu0 %v219_v5 }
  0x24   :  { %191 = vmatpush.msra.mxu3 %v170_v61 }
  0x25   :  { %225 = vmatpush.msrb.mxu0 %v218_v6 }
  0x26   :  { %192 = vmatpush.msra.mxu3 %v169_v62 }
  0x27   :  { %226 = vmatpush.msrb.mxu0 %v217_v8 }
  0x28   :  { %193 = vmatpush.msra.mxu3 %v168_v63 }
  0x29   :  { %227 = vmatpush.msrb.mxu0 %v216_v9 }
  0x2a   :  { %194 = vmatpush.msra.mxu3 %v167_v0 }
  0x2b   :  { %228 = vmatpush.msrb.mxu0 %v215_v11 }
  0x2c   :  { %195 = vmatpush.msra.mxu3 %v166_v1 }
  0x2d   :  { %229 = vmatpush.msrb.mxu0 %v214_v13 }
  0x2e   :  { %196 = vmatpush.msra.mxu3 %v165_v2 }
  0x2f   :  { %230 = vmatpush.msrb.mxu0 %v213_v15 }
  0x30   :  { %197 = vmatpush.msra.mxu3 %v164_v3 }
  0x31   :  { %231 = vmatpush.msrb.mxu0 %v212_v17 }
  0x32   :  { %198 = vmatpush.msra.mxu3 %v163_v4 }
  0x33   :  { %232 = vmatpush.msrb.mxu0 %v211_v19 }
  0x35   :  { %233 = vmatpush.msrb.mxu0 %v210_v21 }
  0x37   :  { %234 = vmatpush.msrb.mxu0 %v209_v23 }
  0x39   :  { %235 = vmatpush.msrb.mxu0 %v208_v25 }
  0x3b   :  { %236 = vmatpush.msrb.mxu0 %v207_v26 }
  0x3d   :  { %237 = vmatpush.msrb.mxu0 %v206_v31 }
  0x3f   :  { %238 = vmatpush.msrb.mxu0 %v205_v32 }
  0x41   :  { %239 = vmatpush.msrb.mxu0 %v204_v33 }
  0x9e   :  { %v75_v54 = vpop.f32.mrf.mxu0 }
  0x9f   :  { %v76_v55 = vadd.f32 %v256_v53, %v75_v54 }
  0xa1   :  { %v78_v56 = vmax.f32 %v76_v55, 0.0 }
  0xa3   :  { %133 = vmatmul.f32.vlgmr.msra.gmra.mxu1 %v78_v56  ;;  %153 = vmatmul.f32.vlgmr.msra.gmra.mxu2 %v78_v56 }
 0x120   :  { %v134_v12 = vpop.f32.mrf.mxu1 }
 0x121   :  { %v135_v14 = vadd.f32 %v134_v12, %v113_v10 }
 0x123   :  { %245 = vst [vmem:[%s599_s11] sm:$0xff] %v135_v14 }
 0x126   :  { %v154_v18 = vpop.f32.mrf.mxu2 }
 0x127   :  { %v155_v20 = vadd.f32 %v154_v18, %v114_v16 }
 0x129   :  { %v157_v22 = vmul.f32 0.5, %v155_v20  ;;  %246 = vst [vmem:[%s599_s11 + $0x8] sm:$0xff] %v155_v20 }
 0x12b   :  { %v158_v24 = vmul.f32 1.442695, %v157_v22 }
 0x12d   :  { %259 = vpow2.f32 %v158_v24 }
 0x133   :  { %v260_v28 = vpop.eup %259 }
 0x134   :  { %v161_v29 = vmul.f32 %v260_v28, %v160_v27 }
 0x136   :  { %v162_v30 = vadd.f32 %v161_v29, %v135_v14 }
 0x138   :  { %199 = vmatmul.f32.vlgmr.msra.gmra.mxu3 %v162_v30  ;;  %247 = vst [vmem:[%s599_s11 + $0x10] sm:$0xff] %v162_v30 }
 0x1bb   :  { %v200_v35 = vpop.f32.mrf.mxu3 }
 0x1bc   :  { %v201_v36 = vadd.f32 %v257_v34, %v200_v35 }
 0x1be   :  { %v203_v37 = vmax.f32 %v201_v36, 0.0 }
 0x1c0   :  { %240 = vmatmul.f32.vlgmr.msrb.gmra.mxu0 %v203_v37 }
 0x23d   :  { %v241_v39 = vpop.f32.mrf.mxu0 }
 0x23e   :  { %v242_v40 = vadd.f32 %v258_v38, %v241_v39 }
 0x240   :  { %244 = vst [vmem:[%s602_s10] sm:$0xff] %v242_v40 }

</bundles_post_ra>
